<compile_context>
chip_gen: v7x
topology: tpu7x:2x2x1
jax: 0.10.0
libtpu: 0.0.40
codegen_flags: <defaults>
</compile_context>

<pallas_src>
import random

import jax
import jax.numpy as jnp
from jax.experimental import pallas as pl
from jax.experimental.pallas import tpu as pltpu


def _round_up(x, m):
    return ((x + m - 1) // m) * m


def post_encode_kernel(
    post_ref, u_ref, r_ref,
    we_w_ref, we_b_ref,
    w1_wu_ref, w1_wr_ref, w1_b_ref,
    w2_w_ref, w2_b_ref,
    ow_wp_ref, ow_wo_ref, ow_b_ref,
    out_ref,
):
    f32 = jnp.float32
    bf16 = jnp.bfloat16

    # post_rep = relu(w_e(post))            bf16 x bf16 -> f32 accumulate on MXU
    p = jnp.dot(post_ref[...], we_w_ref[...], preferred_element_type=f32) + we_b_ref[...]
    p = jnp.maximum(p, 0.0)

    # x = relu(w_1(cat(u, r)))              concat replaced by two accumulating dots
    x = (jnp.dot(u_ref[...], w1_wu_ref[...], preferred_element_type=f32)
         + jnp.dot(r_ref[...], w1_wr_ref[...], preferred_element_type=f32)
         + w1_b_ref[...])
    x = jnp.maximum(x, 0.0)

    # o = relu(w_2(x))
    o = jnp.dot(x.astype(bf16), w2_w_ref[...], preferred_element_type=f32) + w2_b_ref[...]
    o = jnp.maximum(o, 0.0)

    # att_history = relu(o_w(cat(post_rep, o)))   concat replaced by two accumulating dots
    att = (jnp.dot(p.astype(bf16), ow_wp_ref[...], preferred_element_type=f32)
           + jnp.dot(o.astype(bf16), ow_wo_ref[...], preferred_element_type=f32)
           + ow_b_ref[...])
    out_ref[...] = jnp.maximum(att, 0.0)


def post_encode_pallas(post_rep, u_embed, r_embed, params, *, tile_n=1024):
    """Fused PostEncode forward: batch-gridded, bf16 MXU dots, resident weights."""
    n, contents_dim = post_rep.shape
    embed_dim = params["we_w"].shape[1]

    # Row quantum: 16 rows so bf16 inputs use the native (16, 128) packing tile.
    quantum = 16
    n_pad = _round_up(n, quantum)

    # Batch tile: big (amortize ~0.35 us/step pipeline overhead), but capped so the
    # "parallel" grid gets >= 2 steps (v7x megacore) when the batch allows it.
    tile = min(_round_up(tile_n, quantum), n_pad)
    if n_pad >= 2 * quantum:
        tile = min(tile, _round_up(-(-n_pad // 2), quantum))
    steps = pl.cdiv(n_pad, tile)   # last block handled by Pallas partial-block masking

    bf = jnp.bfloat16
    post_b = jnp.pad(post_rep, ((0, n_pad - n), (0, 0))).astype(bf)
    u_b = jnp.pad(u_embed, ((0, n_pad - n), (0, 0))).astype(bf)
    r_b = jnp.pad(r_embed, ((0, n_pad - n), (0, 0))).astype(bf)

    weights = (
        params["we_w"].astype(bf), params["we_b"],
        params["w1_wu"].astype(bf), params["w1_wr"].astype(bf), params["w1_b"],
        params["w2_w"].astype(bf), params["w2_b"],
        params["ow_wp"].astype(bf), params["ow_wo"].astype(bf), params["ow_b"],
    )

    def batch_spec(d):
        return pl.BlockSpec((tile, d), lambda i: (i, 0))

    def resident_spec(a):
        # constant index_map -> fetched once, stays VMEM-resident across grid steps
        return pl.BlockSpec(a.shape, lambda i: (0, 0))

    out = pl.pallas_call(
        post_encode_kernel,
        out_shape=jax.ShapeDtypeStruct((n_pad, embed_dim), jnp.float32),
        grid=(steps,),
        in_specs=[batch_spec(contents_dim), batch_spec(embed_dim), batch_spec(embed_dim)]
                 + [resident_spec(w) for w in weights],
        out_specs=pl.BlockSpec((tile, embed_dim), lambda i: (i, 0)),
        compiler_params=pltpu.CompilerParams(
            dimension_semantics=("parallel",),      # megacore split on v7x
            # Per-step VMEM at tile=2048 is only a few MB; 32 MiB scoped is ample on
            # v5e/v6e and leaves headroom under v7x's 64 MiB physical VMEM.
            vmem_limit_bytes=32 * 1024 * 1024,
        ),
    )(post_b, u_b, r_b, *weights)
    return out[:n]


def post_encode_ref(post_rep, u_embed, r_embed, params):
    """Pure-JAX f32 reference matching the PyTorch forward semantics."""
    p = jax.nn.relu(post_rep @ params["we_w"] + params["we_b"])
    x = jnp.concatenate([u_embed, r_embed], axis=1)
    w1 = jnp.concatenate([params["w1_wu"], params["w1_wr"]], axis=0)
    x = jax.nn.relu(x @ w1 + params["w1_b"])
    o = jax.nn.relu(x @ params["w2_w"] + params["w2_b"])
    att = jnp.concatenate([p, o], axis=1)
    ow = jnp.concatenate([params["ow_wp"], params["ow_wo"]], axis=0)
    return jax.nn.relu(att @ ow + params["ow_b"])


if __name__ == "__main__":
    # --- small deterministic setup ---------------------------------------
    N = 8                    # number of nodes in the batch
    EMBED_DIM = 32           # embed_dim
    CONTENTS_DIM = 64        # contents_embed_dim
    NUM_USERS = 10
    NUM_RATINGS = 5
    NUM_POSTS = 12

    key = jax.random.PRNGKey(0)
    ks = jax.random.split(key, 16)

    # Embedding tables (u2e.weight, r2e.weight, p2e)
    u2e_weight = jax.random.normal(ks[0], (NUM_USERS, EMBED_DIM), jnp.float32) * 0.1
    r2e_weight = jax.random.normal(ks[1], (NUM_RATINGS, EMBED_DIM), jnp.float32) * 0.1
    p2e = jax.random.normal(ks[2], (NUM_POSTS, CONTENTS_DIM), jnp.float32) * 0.1

    # Linear parameters, stored as (in, out); biases as (1, out) for 2D VMEM layout.
    params = {
        "we_w": jax.random.normal(ks[3], (CONTENTS_DIM, EMBED_DIM), jnp.float32) * 0.1,
        "we_b": jax.random.normal(ks[4], (1, EMBED_DIM), jnp.float32) * 0.1,
        # w_1: Linear(2*E, E) split into the u-half and r-half of the input.
        "w1_wu": jax.random.normal(ks[5], (EMBED_DIM, EMBED_DIM), jnp.float32) * 0.1,
        "w1_wr": jax.random.normal(ks[6], (EMBED_DIM, EMBED_DIM), jnp.float32) * 0.1,
        "w1_b": jax.random.normal(ks[7], (1, EMBED_DIM), jnp.float32) * 0.1,
        "w2_w": jax.random.normal(ks[8], (EMBED_DIM, EMBED_DIM), jnp.float32) * 0.1,
        "w2_b": jax.random.normal(ks[9], (1, EMBED_DIM), jnp.float32) * 0.1,
        # o_w: Linear(2*E, E) split into the post_rep-half and o-half of the input.
        "ow_wp": jax.random.normal(ks[10], (EMBED_DIM, EMBED_DIM), jnp.float32) * 0.1,
        "ow_wo": jax.random.normal(ks[11], (EMBED_DIM, EMBED_DIM), jnp.float32) * 0.1,
        "ow_b": jax.random.normal(ks[12], (1, EMBED_DIM), jnp.float32) * 0.1,
    }

    # Synthetic pu_history / pr_history: per post, a list of (user, rating) interactions.
    rng = random.Random(0)
    pu_history = [[rng.randrange(NUM_USERS) for _ in range(3)] for _ in range(NUM_POSTS)]
    pr_history = [[rng.randrange(NUM_RATINGS) for _ in range(3)] for _ in range(NUM_POSTS)]

    # nodes: batch of post ids
    nodes = [int(v) for v in jax.random.randint(ks[13], (N,), 0, NUM_POSTS)]

    # --- glue: replicate the Python-side gather of the PyTorch forward ----
    # (random.randint history sampling is host-side glue, seeded for determinism)
    u_idx, r_idx = [], []
    for i in nodes:
        iii = rng.randint(0, len(pu_history[i]) - 1)
        u_idx.append(pu_history[i][iii])
        r_idx.append(pr_history[i][iii])

    post_rep = p2e[jnp.asarray(nodes)]                  # (N, CONTENTS_DIM)
    u_embed = u2e_weight[jnp.asarray(u_idx)]            # (N, EMBED_DIM)
    r_embed = r2e_weight[jnp.asarray(r_idx)]            # (N, EMBED_DIM)

    # --- run kernel and check against pure-JAX reference -------------------
    out = post_encode_pallas(post_rep, u_embed, r_embed, params)
    out = jax.block_until_ready(out)

    ref = post_encode_ref(post_rep, u_embed, r_embed, params)
    assert out.shape == (N, EMBED_DIM)
    # bf16 matmul operands (f32 accumulation) -> relaxed tolerance vs f32 ref.
    assert jnp.allclose(out, ref, atol=3e-2, rtol=3e-2), float(jnp.abs(out - ref).max())

    print("KERNEL_OK")
</pallas_src>

<mosaic_0001>
module attributes {stable_mosaic.version = 11 : i64} {
  func.func @post_encode_kernel(%arg0: i32, %arg1: memref<16x64xbf16, #tpu.memory_space<vmem>>, %arg2: memref<16x32xbf16, #tpu.memory_space<vmem>>, %arg3: memref<16x32xbf16, #tpu.memory_space<vmem>>, %arg4: memref<64x32xbf16, #tpu.memory_space<vmem>>, %arg5: memref<1x32xf32, #tpu.memory_space<vmem>>, %arg6: memref<32x32xbf16, #tpu.memory_space<vmem>>, %arg7: memref<32x32xbf16, #tpu.memory_space<vmem>>, %arg8: memref<1x32xf32, #tpu.memory_space<vmem>>, %arg9: memref<32x32xbf16, #tpu.memory_space<vmem>>, %arg10: memref<1x32xf32, #tpu.memory_space<vmem>>, %arg11: memref<32x32xbf16, #tpu.memory_space<vmem>>, %arg12: memref<32x32xbf16, #tpu.memory_space<vmem>>, %arg13: memref<1x32xf32, #tpu.memory_space<vmem>>, %arg14: memref<16x32xf32, #tpu.memory_space<vmem>>) attributes {dimension_semantics = [#tpu.dimension_semantics<parallel>], iteration_bounds = array<i64: 1>, scalar_prefetch = 0 : i64, scratch_operands = 0 : i64, tpu.core_type = #tpu.core_type<tc>, window_params = [{transform_indices = @transform_0, window_bounds = array<i64: 16, 64>}, {transform_indices = @transform_1, window_bounds = array<i64: 16, 32>}, {transform_indices = @transform_2, window_bounds = array<i64: 16, 32>}, {pipeline_mode = #tpu.pipeline_mode<synchronous>, transform_indices = @transform_3, window_bounds = array<i64: 64, 32>}, {pipeline_mode = #tpu.pipeline_mode<synchronous>, transform_indices = @transform_4, window_bounds = array<i64: 1, 32>}, {pipeline_mode = #tpu.pipeline_mode<synchronous>, transform_indices = @transform_5, window_bounds = array<i64: 32, 32>}, {pipeline_mode = #tpu.pipeline_mode<synchronous>, transform_indices = @transform_6, window_bounds = array<i64: 32, 32>}, {pipeline_mode = #tpu.pipeline_mode<synchronous>, transform_indices = @transform_7, window_bounds = array<i64: 1, 32>}, {pipeline_mode = #tpu.pipeline_mode<synchronous>, transform_indices = @transform_8, window_bounds = array<i64: 32, 32>}, {pipeline_mode = #tpu.pipeline_mode<synchronous>, transform_indices = @transform_9, window_bounds = array<i64: 1, 32>}, {pipeline_mode = #tpu.pipeline_mode<synchronous>, transform_indices = @transform_10, window_bounds = array<i64: 32, 32>}, {pipeline_mode = #tpu.pipeline_mode<synchronous>, transform_indices = @transform_11, window_bounds = array<i64: 32, 32>}, {pipeline_mode = #tpu.pipeline_mode<synchronous>, transform_indices = @transform_12, window_bounds = array<i64: 1, 32>}, {transform_indices = @transform_13, window_bounds = array<i64: 16, 32>}]} {
    %c0 = arith.constant 0 : index
    %c0_0 = arith.constant 0 : index
    %0 = vector.load %arg1[%c0, %c0_0] : memref<16x64xbf16, #tpu.memory_space<vmem>>, vector<16x64xbf16>
    %c0_1 = arith.constant 0 : index
    %c0_2 = arith.constant 0 : index
    %1 = vector.load %arg4[%c0_1, %c0_2] : memref<64x32xbf16, #tpu.memory_space<vmem>>, vector<64x32xbf16>
    %cst = arith.constant dense<0.000000e+00> : vector<16x32xf32>
    %2 = tpu.matmul %0, %1, %cst {dimension_numbers = #tpu.dot_dimension_numbers<[1], [0], [0], [1], [0, 0, 1, 1], [], []>} : vector<16x64xbf16>, vector<64x32xbf16>, vector<16x32xf32> -> vector<16x32xf32>
    %c0_3 = arith.constant 0 : index
    %c0_4 = arith.constant 0 : index
    %3 = vector.load %arg5[%c0_3, %c0_4] : memref<1x32xf32, #tpu.memory_space<vmem>>, vector<1x32xf32>
    %4 = vector.broadcast %3 : vector<1x32xf32> to vector<16x32xf32>
    %5 = arith.addf %2, %4 : vector<16x32xf32>
    %cst_5 = arith.constant 0.000000e+00 : f32
    %6 = vector.broadcast %cst_5 : f32 to vector<16x32xf32>
    %7 = arith.maximumf %5, %6 : vector<16x32xf32>
    %c0_6 = arith.constant 0 : index
    %c0_7 = arith.constant 0 : index
    %8 = vector.load %arg2[%c0_6, %c0_7] : memref<16x32xbf16, #tpu.memory_space<vmem>>, vector<16x32xbf16>
    %c0_8 = arith.constant 0 : index
    %c0_9 = arith.constant 0 : index
    %9 = vector.load %arg6[%c0_8, %c0_9] : memref<32x32xbf16, #tpu.memory_space<vmem>>, vector<32x32xbf16>
    %cst_10 = arith.constant dense<0.000000e+00> : vector<16x32xf32>
    %10 = tpu.matmul %8, %9, %cst_10 {dimension_numbers = #tpu.dot_dimension_numbers<[1], [0], [0], [1], [0, 0, 1, 1], [], []>} : vector<16x32xbf16>, vector<32x32xbf16>, vector<16x32xf32> -> vector<16x32xf32>
    %c0_11 = arith.constant 0 : index
    %c0_12 = arith.constant 0 : index
    %11 = vector.load %arg3[%c0_11, %c0_12] : memref<16x32xbf16, #tpu.memory_space<vmem>>, vector<16x32xbf16>
    %c0_13 = arith.constant 0 : index
    %c0_14 = arith.constant 0 : index
    %12 = vector.load %arg7[%c0_13, %c0_14] : memref<32x32xbf16, #tpu.memory_space<vmem>>, vector<32x32xbf16>
    %cst_15 = arith.constant dense<0.000000e+00> : vector<16x32xf32>
    %13 = tpu.matmul %11, %12, %cst_15 {dimension_numbers = #tpu.dot_dimension_numbers<[1], [0], [0], [1], [0, 0, 1, 1], [], []>} : vector<16x32xbf16>, vector<32x32xbf16>, vector<16x32xf32> -> vector<16x32xf32>
    %14 = arith.addf %10, %13 : vector<16x32xf32>
    %c0_16 = arith.constant 0 : index
    %c0_17 = arith.constant 0 : index
    %15 = vector.load %arg8[%c0_16, %c0_17] : memref<1x32xf32, #tpu.memory_space<vmem>>, vector<1x32xf32>
    %16 = vector.broadcast %15 : vector<1x32xf32> to vector<16x32xf32>
    %17 = arith.addf %14, %16 : vector<16x32xf32>
    %cst_18 = arith.constant 0.000000e+00 : f32
    %18 = vector.broadcast %cst_18 : f32 to vector<16x32xf32>
    %19 = arith.maximumf %17, %18 : vector<16x32xf32>
    %20 = arith.truncf %19 : vector<16x32xf32> to vector<16x32xbf16>
    %c0_19 = arith.constant 0 : index
    %c0_20 = arith.constant 0 : index
    %21 = vector.load %arg9[%c0_19, %c0_20] : memref<32x32xbf16, #tpu.memory_space<vmem>>, vector<32x32xbf16>
    %cst_21 = arith.constant dense<0.000000e+00> : vector<16x32xf32>
    %22 = tpu.matmul %20, %21, %cst_21 {dimension_numbers = #tpu.dot_dimension_numbers<[1], [0], [0], [1], [0, 0, 1, 1], [], []>} : vector<16x32xbf16>, vector<32x32xbf16>, vector<16x32xf32> -> vector<16x32xf32>
    %c0_22 = arith.constant 0 : index
    %c0_23 = arith.constant 0 : index
    %23 = vector.load %arg10[%c0_22, %c0_23] : memref<1x32xf32, #tpu.memory_space<vmem>>, vector<1x32xf32>
    %24 = vector.broadcast %23 : vector<1x32xf32> to vector<16x32xf32>
    %25 = arith.addf %22, %24 : vector<16x32xf32>
    %cst_24 = arith.constant 0.000000e+00 : f32
    %26 = vector.broadcast %cst_24 : f32 to vector<16x32xf32>
    %27 = arith.maximumf %25, %26 : vector<16x32xf32>
    %28 = arith.truncf %7 : vector<16x32xf32> to vector<16x32xbf16>
    %c0_25 = arith.constant 0 : index
    %c0_26 = arith.constant 0 : index
    %29 = vector.load %arg11[%c0_25, %c0_26] : memref<32x32xbf16, #tpu.memory_space<vmem>>, vector<32x32xbf16>
    %cst_27 = arith.constant dense<0.000000e+00> : vector<16x32xf32>
    %30 = tpu.matmul %28, %29, %cst_27 {dimension_numbers = #tpu.dot_dimension_numbers<[1], [0], [0], [1], [0, 0, 1, 1], [], []>} : vector<16x32xbf16>, vector<32x32xbf16>, vector<16x32xf32> -> vector<16x32xf32>
    %31 = arith.truncf %27 : vector<16x32xf32> to vector<16x32xbf16>
    %c0_28 = arith.constant 0 : index
    %c0_29 = arith.constant 0 : index
    %32 = vector.load %arg12[%c0_28, %c0_29] : memref<32x32xbf16, #tpu.memory_space<vmem>>, vector<32x32xbf16>
    %cst_30 = arith.constant dense<0.000000e+00> : vector<16x32xf32>
    %33 = tpu.matmul %31, %32, %cst_30 {dimension_numbers = #tpu.dot_dimension_numbers<[1], [0], [0], [1], [0, 0, 1, 1], [], []>} : vector<16x32xbf16>, vector<32x32xbf16>, vector<16x32xf32> -> vector<16x32xf32>
    %34 = arith.addf %30, %33 : vector<16x32xf32>
    %c0_31 = arith.constant 0 : index
    %c0_32 = arith.constant 0 : index
    %35 = vector.load %arg13[%c0_31, %c0_32] : memref<1x32xf32, #tpu.memory_space<vmem>>, vector<1x32xf32>
    %36 = vector.broadcast %35 : vector<1x32xf32> to vector<16x32xf32>
    %37 = arith.addf %34, %36 : vector<16x32xf32>
    %cst_33 = arith.constant 0.000000e+00 : f32
    %38 = vector.broadcast %cst_33 : f32 to vector<16x32xf32>
    %39 = arith.maximumf %37, %38 : vector<16x32xf32>
    %c0_34 = arith.constant 0 : index
    %c0_35 = arith.constant 0 : index
    %40 = vector.load %arg14[%c0_34, %c0_35] : memref<16x32xf32, #tpu.memory_space<vmem>>, vector<16x32xf32>
    tpu.vector_store %arg14[%c0_34, %c0_35], %39 {strides = array<i32>} : memref<16x32xf32, #tpu.memory_space<vmem>>, vector<16x32xf32>,
    return
  }
  func.func @transform_0(%arg0: i32) -> (i32, i32) {
    %c0_i32 = arith.constant 0 : i32
    %c0_i32_0 = arith.constant 0 : i32
    return %arg0, %c0_i32 : i32, i32
  }
  func.func @transform_1(%arg0: i32) -> (i32, i32) {
    %c0_i32 = arith.constant 0 : i32
    %c0_i32_0 = arith.constant 0 : i32
    return %arg0, %c0_i32 : i32, i32
  }
  func.func @transform_2(%arg0: i32) -> (i32, i32) {
    %c0_i32 = arith.constant 0 : i32
    %c0_i32_0 = arith.constant 0 : i32
    return %arg0, %c0_i32 : i32, i32
  }
  func.func @transform_3(%arg0: i32) -> (i32, i32) {
    %c0_i32 = arith.constant 0 : i32
    %c0_i32_0 = arith.constant 0 : i32
    %c0_i32_1 = arith.constant 0 : i32
    return %c0_i32, %c0_i32_0 : i32, i32
  }
  func.func @transform_4(%arg0: i32) -> (i32, i32) {
    %c0_i32 = arith.constant 0 : i32
    %c0_i32_0 = arith.constant 0 : i32
    %c0_i32_1 = arith.constant 0 : i32
    return %c0_i32, %c0_i32_0 : i32, i32
  }
  func.func @transform_5(%arg0: i32) -> (i32, i32) {
    %c0_i32 = arith.constant 0 : i32
    %c0_i32_0 = arith.constant 0 : i32
    %c0_i32_1 = arith.constant 0 : i32
    return %c0_i32, %c0_i32_0 : i32, i32
  }
  func.func @transform_6(%arg0: i32) -> (i32, i32) {
    %c0_i32 = arith.constant 0 : i32
    %c0_i32_0 = arith.constant 0 : i32
    %c0_i32_1 = arith.constant 0 : i32
    return %c0_i32, %c0_i32_0 : i32, i32
  }
  func.func @transform_7(%arg0: i32) -> (i32, i32) {
    %c0_i32 = arith.constant 0 : i32
    %c0_i32_0 = arith.constant 0 : i32
    %c0_i32_1 = arith.constant 0 : i32
    return %c0_i32, %c0_i32_0 : i32, i32
  }
  func.func @transform_8(%arg0: i32) -> (i32, i32) {
    %c0_i32 = arith.constant 0 : i32
    %c0_i32_0 = arith.constant 0 : i32
    %c0_i32_1 = arith.constant 0 : i32
    return %c0_i32, %c0_i32_0 : i32, i32
  }
  func.func @transform_9(%arg0: i32) -> (i32, i32) {
    %c0_i32 = arith.constant 0 : i32
    %c0_i32_0 = arith.constant 0 : i32
    %c0_i32_1 = arith.constant 0 : i32
    return %c0_i32, %c0_i32_0 : i32, i32
  }
  func.func @transform_10(%arg0: i32) -> (i32, i32) {
    %c0_i32 = arith.constant 0 : i32
    %c0_i32_0 = arith.constant 0 : i32
    %c0_i32_1 = arith.constant 0 : i32
    return %c0_i32, %c0_i32_0 : i32, i32
  }
  func.func @transform_11(%arg0: i32) -> (i32, i32) {
    %c0_i32 = arith.constant 0 : i32
    %c0_i32_0 = arith.constant 0 : i32
    %c0_i32_1 = arith.constant 0 : i32
    return %c0_i32, %c0_i32_0 : i32, i32
  }
  func.func @transform_12(%arg0: i32) -> (i32, i32) {
    %c0_i32 = arith.constant 0 : i32
    %c0_i32_0 = arith.constant 0 : i32
    %c0_i32_1 = arith.constant 0 : i32
    return %c0_i32, %c0_i32_0 : i32, i32
  }
  func.func @transform_13(%arg0: i32) -> (i32, i32) {
    %c0_i32 = arith.constant 0 : i32
    %c0_i32_0 = arith.constant 0 : i32
    return %arg0, %c0_i32 : i32, i32
  }
}

</mosaic_0001>

<bundles_post_ra>
// kernel: tpu_custom_call.1
= control target key start
LH: loop header
LB: loop body
LE: loop exit
PB: predicated region body
PF: predicated region fallthrough
CT: control target
= control target key end

     0   :  { %18 = vsyncpa [#allocation3], 0  ;;  %s1048_s0 = inlined_call_operand.hbm [shape: bf16[16,64], index: 0, kind: input, shape index: {}]   ;;  %s1049_s1 = inlined_call_operand.hbm [shape: bf16[16,32], index: 1, kind: input, shape index: {}]   ;;  %s1050_s2 = inlined_call_operand.hbm [shape: bf16[16,32], index: 2, kind: input, shape index: {}]   ;;  %s1051_s3 = inlined_call_operand.vmem [shape: bf16[64,32], index: 3, kind: input, shape index: {}]   ;;  %s1052_s4 = inlined_call_operand.vmem [shape: f32[1,32], index: 4, kind: input, shape index: {}]   ;;  %s1053_s5 = inlined_call_operand.vmem [shape: bf16[32,32], index: 5, kind: input, shape index: {}]   ;;  %s1054_s6 = inlined_call_operand.vmem [shape: bf16[32,32], index: 6, kind: input, shape index: {}]   ;;  %s1055_s7 = inlined_call_operand.vmem [shape: f32[1,32], index: 7, kind: input, shape index: {}]   ;;  %s1056_s8 = inlined_call_operand.vmem [shape: bf16[32,32], index: 8, kind: input, shape index: {}]   ;;  %s1057_s9 = inlined_call_operand.hbm [shape: f32[1,32], index: 9, kind: input, shape index: {}]   ;;  %s1058_s10 = inlined_call_operand.vmem [shape: bf16[32,32], index: 10, kind: input, shape index: {}]   ;;  %s1059_s11 = inlined_call_operand.vmem [shape: bf16[32,32], index: 11, kind: input, shape index: {}]   ;;  %s1060_s12 = inlined_call_operand.vmem [shape: f32[1,32], index: 12, kind: input, shape index: {}]   ;;  %s1061_s13 = inlined_call_operand.hbm [shape: f32[16,32], index: 13, kind: output, shape index: {}]  }
   0x1   :  { %19 = vsyncpa [#allocation6], 0 }
   0x2   :  { %20 = vsyncpa [#allocation9], 0 }
   0x3   :  { %21 = vsyncpa [#allocation4], 0  ;;  %s807_s25 = smov [#allocation5]   ;;  %s808_s27 = smov [#allocation2]  }
   0x4   :  { %s39_s26 = sshll.u32 %s807_s25, 4  ;;  %s27_s28 = sshll.u32 %s808_s27, 4  ;;  %s40_s26 = int_to_ptr.vmem [resolvable:$true] %s39_s26  ;;  %s888_s28 = int_to_ptr.vmem [resolvable:$true] %s27_s28 }
   0x5   :  { %s689_s14 = scalar_lea.hbm %s1049_s1, 128 }
   0x6   :  { %p690_p0 = scmp.ne.s32.totalorder %s1049_s1, %s689_s14  ;;  %p693_p1 = scmp.lt.u32.totalorder %s689_s14, %s1049_s1 }
   0x8   :  { %p695_p2 = pnand %p693_p1, %p690_p0 }
   0xa   :  { %698 = shalt.err (!%p695_p2)
}
   0xb   :  { %s699_s19 = scalar_lea.vmem %s40_s26, 128  ;;  %p704_p4 = scmp.lt.s32.totalorder %s40_s26, %s40_s26 }
   0xc   :  { %p700_p3 = scmp.ne.s32.totalorder %s40_s26, %s699_s19  ;;  %p705_p5 = scmp.lt.s32.totalorder %s699_s19, %s699_s19 }
   0xe   :  { %p706_p6 = por %p705_p5, %p704_p4 }
  0x10   :  { %p707_p7 = pnand %p706_p6, %p700_p3 }
  0x12   :  { %710 = shalt.err (!%p707_p7)
}
  0x13   :  { %s809_s20 = smov 64   ;;  %s810_s21 = smov 4  }
  0x14   :  { %45 = dma.hbm_to_vmem [thread:$0]  %s1049_s1, 128, %s40_s26, [#allocation6], %s809_s20, %s809_s20, %s810_s21  }
  0x15   :  { %s711_s27 = scalar_lea.hbm %s1048_s0, 128 }
  0x16   :  { %p712_p8 = scmp.ne.s32.totalorder %s1048_s0, %s711_s27  ;;  %p715_p9 = scmp.lt.u32.totalorder %s711_s27, %s1048_s0 }
  0x18   :  { %p717_p10 = pnand %p715_p9, %p712_p8 }
  0x1a   :  { %720 = shalt.err (!%p717_p10)
}
  0x1b   :  { %s721_s16 = scalar_lea.vmem %s888_s28, 128  ;;  %p726_p12 = scmp.lt.s32.totalorder %s888_s28, %s888_s28 }
  0x1c   :  { %p722_p11 = scmp.ne.s32.totalorder %s888_s28, %s721_s16  ;;  %p727_p13 = scmp.lt.s32.totalorder %s721_s16, %s721_s16 }
  0x1e   :  { %p728_p0 = por %p727_p13, %p726_p12 }
  0x20   :  { %p729_p1 = pnand %p728_p0, %p722_p11 }
  0x22   :  { %732 = shalt.err (!%p729_p1)
}
  0x23   :  { %33 = dma.hbm_to_vmem [thread:$0]  %s1048_s0, 128, %s888_s28, [#allocation3], %s809_s20, %s809_s20, %s810_s21  }
  0x24   :  { %s811_s17 = smov [#allocation7]   ;;  %s812_s19 = smov [#allocation8]  }
  0x25   :  { %s51_s18 = sshll.u32 %s811_s17, 4  ;;  %s76_s22 = sshll.u32 %s812_s19, 4  ;;  %s52_s18 = int_to_ptr.vmem [resolvable:$true] %s51_s18  ;;  %s77_s22 = int_to_ptr.vmem [resolvable:$true] %s76_s22 }
  0x26   :  { %s733_s25 = scalar_lea.hbm %s1050_s2, 128 }
  0x27   :  { %p734_p2 = scmp.ne.s32.totalorder %s1050_s2, %s733_s25  ;;  %p737_p3 = scmp.lt.u32.totalorder %s733_s25, %s1050_s2 }
  0x29   :  { %p739_p4 = pnand %p737_p3, %p734_p2 }
  0x2b   :  { %742 = shalt.err (!%p739_p4)
}
  0x2c   :  { %s743_s0 = scalar_lea.vmem %s52_s18, 128  ;;  %p748_p6 = scmp.lt.s32.totalorder %s52_s18, %s52_s18 }
  0x2d   :  { %p744_p5 = scmp.ne.s32.totalorder %s52_s18, %s743_s0  ;;  %p749_p7 = scmp.lt.s32.totalorder %s743_s0, %s743_s0 }
  0x2f   :  { %p750_p8 = por %p749_p7, %p748_p6 }
  0x31   :  { %p751_p9 = pnand %p750_p8, %p744_p5 }
  0x33   :  { %754 = shalt.err (!%p751_p9)
}
  0x34   :  { %57 = dma.hbm_to_vmem [thread:$0]  %s1050_s2, 128, %s52_s18, [#allocation6], %s809_s20, %s809_s20, %s810_s21  }
  0x35   :  { %s755_s26 = scalar_lea.hbm %s1057_s9, 16 }
  0x36   :  { %p756_p10 = scmp.ne.s32.totalorder %s1057_s9, %s755_s26  ;;  %p759_p11 = scmp.lt.u32.totalorder %s755_s26, %s1057_s9 }
  0x38   :  { %p761_p12 = pnand %p759_p11, %p756_p10 }
  0x3a   :  { %764 = shalt.err (!%p761_p12)
}
  0x3b   :  { %s765_s25 = scalar_lea.vmem %s77_s22, 16  ;;  %s769_s27 = scalar_lea.vmem %s77_s22, 32 }
  0x3c   :  { %p766_p13 = scmp.ne.s32.totalorder %s77_s22, %s765_s25  ;;  %p770_p0 = scmp.lt.s32.totalorder %s77_s22, %s77_s22 }
  0x3d   :  { %p771_p1 = scmp.lt.s32.totalorder %s769_s27, %s765_s25 }
  0x3f   :  { %p772_p2 = por %p771_p1, %p770_p0 }
  0x41   :  { %p773_p3 = pnand %p772_p2, %p766_p13 }
  0x43   :  { %776 = shalt.err (!%p773_p3)
}
  0x44   :  { %79 = dma.hbm_to_vmem [thread:$0]  %s1057_s9, 16, %s77_s22, [#allocation9]  }
  0x45   :  { %799 = dma.done.wait [#allocation3], 128  }
  0x46   :  { %800 = vsyncadd [#allocation3], 4294967168 }
  0x47   :  { %801 = dma.done.wait [#allocation6], 256  }
  0x48   :  { %802 = vsyncadd [#allocation6], 4294967040 }
  0x49   :  { %803 = dma.done.wait [#allocation9], 16  }
  0x4a   :  { %804 = vsyncadd [#allocation9], 4294967280  ;;  %v813_v0 = vmov 0.0   ;;  %vm814_vm0 = vmmov 0   ;;  %v672_v1 = vld [vmem:[%s1054_s6] sm:$0xff]   ;;  %v673_v2 = vld [vmem:[%s1054_s6 + $0x8] sm:$0xff]  }
  0x4b   :  { %621 = vmatprep.subr.bf16.mxu1 %v813_v0  ;;  %625 = vmatprep.mubr.msk.bf16.mxu1 %vm814_vm0, %v813_v0  ;;  %v674_v3 = vld [vmem:[#allocation7] sm:$0xff]   ;;  %v675_v4 = vld [vmem:[%s1053_s5] sm:$0xff]   ;;  %vm221_vm1 = vcmask 261120   ;;  %v676_v6 = vld [vmem:[%s1053_s5 + $0x8] sm:$0xff]   ;;  %vm145_vm2 = vcmask 523264   ;;  %s815_s30 = smov [#allocation10]  }
  0x4c   :  { %609 = vmatprep.subr.bf16.mxu0 %v813_v0  ;;  %617 = vmatprep.mubr.msk.bf16.mxu0 %vm814_vm0, %v813_v0  ;;  %v678_v5 = vld [vmem:[%s1051_s3] sm:$0xff]   ;;  %v679_v7 = vld [vmem:[%s1051_s3 + $0x8] sm:$0xff]   ;;  %v680_v8 = vld [vmem:[%s1051_s3 + $0x10] sm:$0xff]   ;;  %s548_s14 = sshll.u32 %s815_s30, 4  ;;  %s549_s14 = int_to_ptr.vmem [resolvable:$true] %s548_s14 }
  0x4d   :  { %622 = vmatpush3.bf16.msra.mxu1 %v672_v1  ;;  %610 = vmatpush3.bf16.msra.mxu0 %v678_v5  ;;  %v677_v9 = vld [vmem:[#allocation5] sm:$0xff]   ;;  %v681_v10 = vld [vmem:[%s1051_s3 + $0x18] sm:$0xff]   ;;  %v682_v11 = vld [vmem:[#allocation2] sm:$0xff]   ;;  %s777_s0 = scalar_lea.vmem %s549_s14, 256  ;;  %p782_p5 = scmp.lt.s32.totalorder %s549_s14, %s549_s14 }
  0x4e   :  { %623 = vmatprep.subr.bf16.mxu1 %v813_v0  ;;  %611 = vmatprep.subr.bf16.mxu0 %v813_v0  ;;  %v683_v12 = vld [vmem:[%s1056_s8] sm:$0xff]   ;;  %v684_v13 = vld [vmem:[%s1056_s8 + $0x8] sm:$0xff]   ;;  %v578_v44 = vld [vmem:[#allocation8] ss:$0 sm:$0xff]  ;;  %p778_p4 = scmp.ne.s32.totalorder %s549_s14, %s777_s0  ;;  %p783_p6 = scmp.lt.s32.totalorder %s777_s0, %s777_s0 }
  0x4f   :  { %v577_v19 = vld [vmem:[%s1055_s7] ss:$0 sm:$0xff]  ;;  %v686_v31 = vld [vmem:[%s1058_s10 + $0x8] sm:$0xff]  }
  0x50   :  { %v685_v29 = vld [vmem:[%s1058_s10] sm:$0xff]   ;;  %v688_v43 = vld [vmem:[%s1059_s11 + $0x8] sm:$0xff]   ;;  %p784_p7 = por %p783_p6, %p782_p5 }
  0x51   :  { %624 = vmatpush3.bf16.msra.mxu1 %v673_v2  ;;  %612 = vmatpush3.bf16.msra.mxu0 %v679_v7  ;;  %v562_v32 = vld [vmem:[%s1052_s4] ss:$0 sm:$0xff] }
  0x52   :  { %629 = vmatprep.subr.bf16.mxu1 %v813_v0  ;;  %613 = vmatprep.subr.bf16.mxu0 %v813_v0  ;;  %v687_v42 = vld [vmem:[%s1059_s11] sm:$0xff]   ;;  %p785_p8 = pnand %p784_p7, %p778_p4 }
  0x53   :  { %v588_v59 = vld [vmem:[%s1060_s12] ss:$0 sm:$0xff] }
  0x54   :  { %626 = vmatmul.mubr.msk.bf16.vlgmr.msra.gmra.mrb[0].mxu1 %vm221_vm1, %v674_v3 }
  0x55   :  { %630 = vmatpush3.bf16.msra.mxu1 %v675_v4  ;;  %633 = vmatprep.mubr.msk.bf16.mxu1 %vm814_vm0, %v813_v0 }
  0x56   :  { %631 = vmatprep.subr.bf16.mxu1 %v813_v0  ;;  %614 = vmatpush3.bf16.msra.mxu0 %v680_v8 }
  0x57   :  { %615 = vmatprep.subr.bf16.mxu0 %v813_v0 }
  0x59   :  { %632 = vmatpush3.bf16.msra.mxu1 %v676_v6 }
  0x5a   :  { %645 = vmatprep.subr.bf16.mxu1 %v813_v0  ;;  %616 = vmatpush3.bf16.msra.mxu0 %v681_v10 }
  0x5b   :  { %637 = vmatprep.subr.bf16.mxu0 %v813_v0 }
  0x5c   :  { %634 = vmatmul.mubr.msk.bf16.vlgmr.msra.gmra.mrb[4].mxu1 %vm221_vm1, %v677_v9 }
  0x5d   :  { %649 = vmatprep.mubr.msk.bf16.mxu1 %vm814_vm0, %v813_v0  ;;  %618 = vmatmul.mubr.msk.bf16.vlgmr.msra.gmra.mrb[0].mxu0 %vm145_vm2, %v682_v11 }
  0x5e   :  { %641 = vmatprep.mubr.msk.bf16.mxu0 %vm814_vm0, %v813_v0  ;;  %638 = vmatpush3.bf16.msra.mxu0 %v683_v12 }
  0x5f   :  { %639 = vmatprep.subr.bf16.mxu0 %v813_v0  ;;  %646 = vmatpush3.bf16.msra.mxu1 %v687_v42 }
  0x60   :  { %647 = vmatprep.subr.bf16.mxu1 %v813_v0 }
  0x62   :  { %640 = vmatpush3.bf16.msra.mxu0 %v684_v13 }
  0x63   :  { %653 = vmatprep.subr.bf16.mxu0 %v813_v0  ;;  %648 = vmatpush3.bf16.msra.mxu1 %v688_v43 }
 0x127   :  { %v259_v14 = vpop.f32.mrb[0].mxu1 }
 0x128   :  { %v627_v15 = vpop.f32.mrb[1].mxu1 }
 0x129   :  { %v262_v16 = vpop.f32.mrb[2].mxu1 }
 0x12a   :  { %v628_v17 = vpop.f32.mrb[3].mxu1 }
 0x12f   :  { %v320_v18 = vpop.f32.mrb[4].mxu1 }
 0x130   :  { %v321_v20 = vadd.f32 %v320_v18, %v259_v14  ;;  %v635_v21 = vpop.f32.mrb[5].mxu1  ;;  %v183_v33 = vpop.f32.mrb[0].mxu0 }
 0x131   :  { %v323_v22 = vpop.f32.mrb[6].mxu1  ;;  %v184_v34 = vadd.f32 %v562_v32, %v183_v33  ;;  %v619_v35 = vpop.f32.mrb[1].mxu0 }
 0x132   :  { %v334_v23 = vadd.f32 %v577_v19, %v321_v20  ;;  %v324_v24 = vadd.f32 %v323_v22, %v262_v16  ;;  %v636_v25 = vpop.f32.mrb[7].mxu1  ;;  %v186_v36 = vpop.f32.mrb[2].mxu0 }
 0x133   :  { %v190_v37 = vmax.f32 %v184_v34, 0.0  ;;  %v187_v38 = vadd.f32 %v562_v32, %v186_v36  ;;  %v620_v39 = vpop.f32.mrb[3].mxu0 }
 0x134   :  { %v335_v26 = vadd.f32 %v577_v19, %v324_v24  ;;  %v336_v27 = vmax.f32 %v334_v23, 0.0 }
 0x135   :  { %v191_v40 = vmax.f32 %v187_v38, 0.0 }
 0x136   :  { %v337_v28 = vmax.f32 %v335_v26, 0.0 }
 0x137   :  { %v408_v41 = vpack.c.bf16 %v191_v40, %v190_v37 }
 0x138   :  { %v338_v30 = vpack.c.bf16 %v337_v28, %v336_v27 }
 0x13a   :  { %642 = vmatmul.mubr.msk.bf16.vlgmr.msra.gmra.mrb[4].mxu0 %vm221_vm1, %v338_v30 }
 0x13b   :  { %654 = vmatpush3.bf16.msra.mxu0 %v685_v29  ;;  %657 = vmatprep.mubr.msk.bf16.mxu0 %vm814_vm0, %v813_v0 }
 0x13c   :  { %655 = vmatprep.subr.bf16.mxu0 %v813_v0 }
 0x13f   :  { %656 = vmatpush3.bf16.msra.mxu0 %v686_v31 }
 0x142   :  { %658 = vmatmul.mubr.msk.bf16.vlgmr.msra.gmra.mrb[8].mxu0 %vm221_vm1, %v408_v41 }
 0x20d   :  { %v399_v45 = vpop.f32.mrb[4].mxu0 }
 0x20e   :  { %v400_v46 = vadd.f32 %v578_v44, %v399_v45  ;;  %v643_v47 = vpop.f32.mrb[5].mxu0 }
 0x20f   :  { %v402_v48 = vpop.f32.mrb[6].mxu0 }
 0x210   :  { %v403_v49 = vadd.f32 %v578_v44, %v402_v48  ;;  %v644_v50 = vpop.f32.mrb[7].mxu0  ;;  %v406_v51 = vmax.f32 %v400_v46, 0.0 }
 0x212   :  { %v407_v52 = vmax.f32 %v403_v49, 0.0 }
 0x214   :  { %v413_v53 = vpack.c.bf16 %v407_v52, %v406_v51 }
 0x215   :  { %v523_v54 = vpop.f32.mrb[8].mxu0 }
 0x216   :  { %650 = vmatmul.mubr.msk.bf16.vlgmr.msra.gmra.mrb[8].mxu1 %vm221_vm1, %v413_v53  ;;  %v659_v55 = vpop.f32.mrb[9].mxu0 }
 0x217   :  { %v526_v56 = vpop.f32.mrb[10].mxu0 }
 0x218   :  { %v660_v57 = vpop.f32.mrb[11].mxu0 }
 0x2e9   :  { %v467_v58 = vpop.f32.mrb[8].mxu1 }
 0x2ea   :  { %v524_v60 = vadd.f32 %v523_v54, %v467_v58  ;;  %v651_v61 = vpop.f32.mrb[9].mxu1 }
 0x2eb   :  { %v470_v62 = vpop.f32.mrb[10].mxu1 }
 0x2ec   :  { %v537_v63 = vadd.f32 %v588_v59, %v524_v60  ;;  %v527_v0 = vadd.f32 %v526_v56, %v470_v62  ;;  %v652_v1 = vpop.f32.mrb[11].mxu1 }
 0x2ee   :  { %v539_v2 = vmax.f32 %v537_v63, 0.0  ;;  %v538_v3 = vadd.f32 %v588_v59, %v527_v0 }
 0x2f0   :  { %541 = vst.msk [vmem:[#allocation10] sm:$0xff] %vm221_vm1, %v539_v2  ;;  %v540_v4 = vmax.f32 %v538_v3, 0.0 }
 0x2f2   :  { %542 = vst.msk [vmem:[#allocation10 + $0x8] sm:$0xff] %vm221_vm1, %v540_v4 }
 0x2f3   :  { %788 = shalt.err (!%p785_p8)
}
 0x2f4   :  { %s789_s15 = scalar_lea.hbm %s1061_s13, 256 }
 0x2f5   :  { %p790_p9 = scmp.ne.s32.totalorder %s1061_s13, %s789_s15  ;;  %p793_p10 = scmp.lt.u32.totalorder %s789_s15, %s1061_s13 }
 0x2f7   :  { %p795_p11 = pnand %p793_p10, %p790_p9 }
 0x2f9   :  { %798 = shalt.err (!%p795_p11)
}
 0x2fa   :  { %s816_s5 = smov 128   ;;  %s817_s17 = smov 8  }
 0x2fb   :  { %554 = dma.vmem_to_hbm [thread:$0]  %s549_s14, 256, %s1061_s13, [#allocation4], %s816_s5, %s816_s5, %s817_s17  }
 0x2fc   :  { %805 = dma.done.wait [#allocation4], 256  }
 0x2fd   :  { %806 = vsyncadd [#allocation4], 4294967040 }
 0x2fe   :  { %558 = vsyncpa [#allocation3], 1 }
 0x2ff   :  { %559 = vsyncpa [#allocation6], 1 }
 0x300   :  { %560 = vsyncpa [#allocation9], 1 }
 0x301   :  { %561 = vsyncpa [#allocation4], 1 }

</bundles_post_ra>
